<compile_context>
chip_gen: v6e
topology: v6e:2x2x1
jax: 0.10.0
libtpu: 0.0.40
codegen_flags: <defaults>
</compile_context>

<pallas_src>
import functools

import jax
import jax.numpy as jnp
from jax import lax
from jax.experimental import pallas as pl
from jax.experimental.pallas import tpu as pltpu

_F32_TINY = float(jnp.finfo(jnp.float32).tiny)  # smallest normal f32


def _cdiv(a, b):
    return (a + b - 1) // b


def _round_up(x, m):
    return _cdiv(x, m) * m


def _int_pow(x, n):
    """x**n via trace-time exponentiation-by-squaring (pure VPU multiplies)."""
    result = None
    base = x
    while n > 0:
        if n & 1:
            result = base if result is None else result * base
        n >>= 1
        if n:
            base = base * base
    return result


def _static_pow(x, p):
    """x**p for strictly positive x and a compile-time-constant float p > 0.

    If p is a multiple of 0.5 (e.g. GaitGL's p = 6.5), use an integer multiply
    chain plus at most one sqrt:  x**6.5 = ((x*x)*x)**2 * sqrt(x)
    -> a few VPU muls + 1 EUP op instead of 2 EUP ops (exp, log) per element.
    Otherwise fall back to exp(p*log(x)).
    Note: keep this in f32 — eps**6.5 ~ 1e-39 underflows bf16.
    """
    n2 = p * 2.0
    if abs(n2 - round(n2)) < 1e-9 and 1 <= round(n2) <= 128:
        n2 = int(round(n2))
        ip, half = divmod(n2, 2)
        out = _int_pow(x, ip) if ip > 0 else None
        if half:
            s = jnp.sqrt(x)
            out = s if out is None else out * s
        return out
    return jnp.exp(p * jnp.log(x))


def _gem_fused_kernel_static(x_ref, w_ref, o_ref, *, p, eps):
    """Fused GeM pooling over every bin, compile-time-constant p.

    x_ref : VMEM [TM, HW]    -- lane-dense input rows
    w_ref : VMEM [HW, BPAD]  -- block-diagonal averaging matrix (1/K per bin),
                                zero-padded to a multiple of 128 columns
    o_ref : VMEM [TM, BPAD]
    """
    x = x_ref[...].astype(jnp.float32)
    xc = jnp.maximum(x, eps)                      # clamp(min=eps), strictly > 0
    xp = _static_pow(xc, p)                       # x ** p  (VPU + <=1 EUP op)
    # All bins' averages in one MXU matmul -> [TM, BPAD]; full f32 precision
    # because x**p spans a huge dynamic range (bf16 truncation is ~0.4% rel).
    m = jnp.dot(xp, w_ref[...], preferred_element_type=jnp.float32,
                precision=lax.Precision.HIGHEST)
    # Guard: with p=6.5, eps=1e-6, x**p can flush to zero (TPU FTZ); clamping
    # the mean at the smallest normal keeps log() finite.  Padded zero columns
    # also land here and stay finite (sliced off in the wrapper).
    m = jnp.maximum(m, _F32_TINY)
    o_ref[...] = jnp.exp(jnp.log(m) * (1.0 / p)).astype(o_ref.dtype)


def _gem_fused_kernel_traced(p_ref, x_ref, w_ref, o_ref, *, eps):
    """Fallback for a traced (learnable) GeM exponent p.  p_ref: SMEM (1,)."""
    p = p_ref[0]
    x = x_ref[...].astype(jnp.float32)
    xc = jnp.maximum(x, eps)
    xp = jnp.exp(p * jnp.log(xc))                 # x ** p with a traced exponent
    m = jnp.dot(xp, w_ref[...], preferred_element_type=jnp.float32,
                precision=lax.Precision.HIGHEST)
    m = jnp.maximum(m, _F32_TINY)
    o_ref[...] = jnp.exp(jnp.log(m) * (1.0 / p)).astype(o_ref.dtype)


@functools.lru_cache(maxsize=None)
def _pooling_matrix(hw, bin_num):
    """[HW, BPAD] block-diagonal averaging matrix (f32), BPAD = round_up(sum(bins), 128).

    Built once per (HW, bin_num) and cached (avoids re-emitting the constant
    construction graph on every forward).
    """
    cols = []
    for b in bin_num:
        assert hw % b == 0, "h*w must be divisible by every bin count"
        k = hw // b
        # element (r, j) = 1/k  iff  r // k == j  (matches reshape(b, k).mean(-1))
        cols.append(jnp.repeat(jnp.eye(b, dtype=jnp.float32), k, axis=0) / k)
    w = jnp.concatenate(cols, axis=1)
    btot = w.shape[1]
    bpad = _round_up(btot, 128)                   # lane-dense, unmasked stores
    if bpad != btot:
        w = jnp.pad(w, ((0, 0), (0, bpad - btot)))
    return w


def _gem_hpp(x_flat, bin_num, eps, *, p_static=None, p_arr=None):
    """x_flat: [NC, HW] (native dtype) -> [NC, sum(bin_num)] GeM-pooled."""
    NC, HW = x_flat.shape
    w = _pooling_matrix(HW, tuple(bin_num))
    BPAD = w.shape[1]
    BTOT = sum(bin_num)
    in_bytes = x_flat.dtype.itemsize
    out_bytes = in_bytes

    # Row-tile size: ~4 MiB input tile per buffer (>= ~85% of HBM roofline),
    # multiple of 32 rows (sublane packing for bf16/int8 inputs), capped so the
    # grid keeps >= ~4 steps (2 per v7x TensorCore + pipeline depth), and never
    # larger than NC (a full-extent single block is always legal).
    budget = 4 * 1024 * 1024
    tm = budget // max(1, HW * in_bytes)
    tm = min(tm, 4096)
    tm = min(tm, _round_up(_cdiv(NC, 4), 32))
    tm = max(32, (tm // 32) * 32)
    if tm >= NC:
        tm = NC
    grid = (_cdiv(NC, tm),)

    # Tight VMEM budget from the actual buffers; cap at 32 MiB (v7x headroom).
    vmem_limit = (2 * tm * HW * in_bytes          # double-buffered input tiles
                  + 2 * tm * BPAD * out_bytes     # double-buffered output tiles
                  + 2 * HW * BPAD * 4             # pooling matrix
                  + 2 * tm * HW * 4               # f32 clamp / pow intermediates
                  + 2 * tm * BPAD * 4)            # f32 matmul result
    vmem_limit = int(min(max(vmem_limit, 4 << 20), 32 << 20))

    x_spec = pl.BlockSpec((tm, HW), lambda i: (i, 0))      # lane-dense rows
    w_spec = pl.BlockSpec((HW, BPAD), lambda i: (0, 0))    # pooling matrix
    o_spec = pl.BlockSpec((tm, BPAD), lambda i: (i, 0))

    if p_static is not None:
        kernel = functools.partial(_gem_fused_kernel_static,
                                   p=float(p_static), eps=float(eps))
        in_specs = [x_spec, w_spec]
        args = (x_flat, w)
    else:
        kernel = functools.partial(_gem_fused_kernel_traced, eps=float(eps))
        in_specs = [pl.BlockSpec(memory_space=pltpu.SMEM), x_spec, w_spec]
        args = (p_arr, x_flat, w)

    out = pl.pallas_call(
        kernel,
        out_shape=jax.ShapeDtypeStruct((NC, BPAD), x_flat.dtype),
        grid=grid,
        in_specs=in_specs,
        out_specs=o_spec,
        compiler_params=pltpu.CompilerParams(
            dimension_semantics=("parallel",),
            vmem_limit_bytes=vmem_limit),
    )(*args)
    # Slice off the zero-padded pooling columns (rows were never padded).
    return out[:, :BTOT]


class GeMHPPPallas:
    """JAX/Pallas port of opengait GeMHPP (GaitGL's HPP head)."""

    def __init__(self, bin_num=(64,), p=6.5, eps=1e-6):
        self.bin_num = tuple(int(b) for b in bin_num)
        # nn.Parameter(torch.ones(1) * p) -- deterministic init.  The static
        # float is the inference fast path; the array is the traced fallback.
        self.p_static = float(p)
        self.p = jnp.ones((1,), dtype=jnp.float32) * jnp.float32(p)
        self.eps = float(eps)

    def __call__(self, x, p=None):
        """x: [n, c, h, w]  ->  [n, c, sum(bin_num)]

        Pass `p=<traced array>` to use a learnable/traced exponent (training);
        by default the compile-time-constant fast path is used.
        """
        n, c, h, w = x.shape
        x_flat = x.reshape(n * c, h * w)   # keep native dtype (bf16 halves HBM reads)
        if p is None:
            z = _gem_hpp(x_flat, self.bin_num, self.eps, p_static=self.p_static)
        else:
            p_arr = jnp.asarray(p, dtype=jnp.float32).reshape((1,))
            z = _gem_hpp(x_flat, self.bin_num, self.eps, p_arr=p_arr)
        return z.reshape(n, c, -1)


def _reference(x, p, bin_num, eps=1e-6):
    """Pure-JAX reference matching the PyTorch forward (same FTZ guard)."""
    n, c, h, w = x.shape
    outs = []
    for b in bin_num:
        z = x.reshape(n, c, b, -1).astype(jnp.float32)
        z = jnp.maximum(z, eps) ** p
        m = jnp.maximum(jnp.mean(z, axis=-1), _F32_TINY)
        outs.append(m ** (1.0 / p))
    return jnp.concatenate(outs, axis=-1)


if __name__ == "__main__":
    k1, k2 = jax.random.split(jax.random.PRNGKey(0))

    # Case 1: the GaitGL default — bin_num=(64,), static-p fast path.
    n, c, h, w = 2, 4, 16, 16
    x = jax.random.uniform(k1, (n, c, h, w), dtype=jnp.float32)
    mod = GeMHPPPallas(bin_num=(64,), p=6.5)
    out = jax.block_until_ready(mod(x))
    assert out.shape == (n, c, 64), out.shape
    ref = _reference(x, 6.5, (64,))
    assert jnp.allclose(out, ref, rtol=1e-4, atol=1e-5), (
        float(jnp.max(jnp.abs(out - ref))))

    # Case 2: multiple bins fused into one kernel + NC not a multiple of the tile.
    n2, c2, h2, w2 = 2, 5, 16, 16
    x2 = jax.random.uniform(k2, (n2, c2, h2, w2), dtype=jnp.float32)
    bins = (16, 8, 4, 2, 1)
    mod2 = GeMHPPPallas(bin_num=bins, p=6.5)
    out2 = jax.block_until_ready(mod2(x2))
    assert out2.shape == (n2, c2, sum(bins)), out2.shape
    ref2 = _reference(x2, 6.5, bins)
    assert jnp.allclose(out2, ref2, rtol=1e-4, atol=1e-5), (
        float(jnp.max(jnp.abs(out2 - ref2))))

    # Case 3: traced-p fallback path (training-time learnable exponent).
    out3 = jax.block_until_ready(mod(x, p=mod.p))
    assert jnp.allclose(out3, ref, rtol=1e-4, atol=1e-5), (
        float(jnp.max(jnp.abs(out3 - ref))))

    print("KERNEL_OK")
</pallas_src>

<mosaic_0001>
module attributes {stable_mosaic.version = 11 : i64} {
  func.func @_gem_fused_kernel_static(%arg0: i32, %arg1: memref<8x256xf32, #tpu.memory_space<vmem>>, %arg2: memref<256x128xf32, #tpu.memory_space<vmem>>, %arg3: memref<8x128xf32, #tpu.memory_space<vmem>>) attributes {dimension_semantics = [#tpu.dimension_semantics<parallel>], iteration_bounds = array<i64: 1>, scalar_prefetch = 0 : i64, scratch_operands = 0 : i64, tpu.core_type = #tpu.core_type<tc>, window_params = [{transform_indices = @transform_0, window_bounds = array<i64: 8, 256>}, {pipeline_mode = #tpu.pipeline_mode<synchronous>, transform_indices = @transform_1, window_bounds = array<i64: 256, 128>}, {transform_indices = @transform_2, window_bounds = array<i64: 8, 128>}]} {
    %c0 = arith.constant 0 : index
    %c0_0 = arith.constant 0 : index
    %0 = vector.load %arg1[%c0, %c0_0] : memref<8x256xf32, #tpu.memory_space<vmem>>, vector<8x256xf32>
    %cst = arith.constant 9.99999997E-7 : f32
    %1 = vector.broadcast %cst : f32 to vector<8x256xf32>
    %2 = arith.maximumf %0, %1 : vector<8x256xf32>
    %3 = arith.mulf %2, %2 : vector<8x256xf32>
    %4 = arith.mulf %3, %3 : vector<8x256xf32>
    %5 = arith.mulf %3, %4 : vector<8x256xf32>
    %6 = math.sqrt %2 : vector<8x256xf32>
    %7 = arith.mulf %5, %6 : vector<8x256xf32>
    %c0_1 = arith.constant 0 : index
    %c0_2 = arith.constant 0 : index
    %8 = vector.load %arg2[%c0_1, %c0_2] : memref<256x128xf32, #tpu.memory_space<vmem>>, vector<256x128xf32>
    %cst_3 = arith.constant dense<0.000000e+00> : vector<8x128xf32>
    %9 = tpu.matmul %7, %8, %cst_3 {dimension_numbers = #tpu.dot_dimension_numbers<[1], [0], [0], [1], [0, 0, 1, 1], [], []>, precision = #tpu.contract_precision<fp32>} : vector<8x256xf32>, vector<256x128xf32>, vector<8x128xf32> -> vector<8x128xf32>
    %cst_4 = arith.constant 1.17549435E-38 : f32
    %10 = vector.broadcast %cst_4 : f32 to vector<8x128xf32>
    %11 = arith.maximumf %9, %10 : vector<8x128xf32>
    %12 = math.log %11 : vector<8x128xf32>
    %cst_5 = arith.constant 0.15384616 : f32
    %13 = vector.broadcast %cst_5 : f32 to vector<8x128xf32>
    %14 = arith.mulf %12, %13 : vector<8x128xf32>
    %15 = math.exp %14 : vector<8x128xf32>
    %c0_6 = arith.constant 0 : index
    %c0_7 = arith.constant 0 : index
    %16 = vector.load %arg3[%c0_6, %c0_7] : memref<8x128xf32, #tpu.memory_space<vmem>>, vector<8x128xf32>
    tpu.vector_store %arg3[%c0_6, %c0_7], %15 {strides = array<i32>} : memref<8x128xf32, #tpu.memory_space<vmem>>, vector<8x128xf32>,
    return
  }
  func.func @transform_0(%arg0: i32) -> (i32, i32) {
    %c0_i32 = arith.constant 0 : i32
    %c0_i32_0 = arith.constant 0 : i32
    return %arg0, %c0_i32 : i32, i32
  }
  func.func @transform_1(%arg0: i32) -> (i32, i32) {
    %c0_i32 = arith.constant 0 : i32
    %c0_i32_0 = arith.constant 0 : i32
    %c0_i32_1 = arith.constant 0 : i32
    return %c0_i32, %c0_i32_0 : i32, i32
  }
  func.func @transform_2(%arg0: i32) -> (i32, i32) {
    %c0_i32 = arith.constant 0 : i32
    %c0_i32_0 = arith.constant 0 : i32
    return %arg0, %c0_i32 : i32, i32
  }
}

</mosaic_0001>

<bundles_post_ra>
// kernel: tpu_custom_call.1
= control target key start
LH: loop header
LB: loop body
LE: loop exit
PB: predicated region body
PF: predicated region fallthrough
CT: control target
= control target key end

     0   :  { %7 = vsyncpa [#allocation3], 0  ;;  %s1908_s0 = inlined_call_operand.hbm [shape: f32[8,256], index: 0, kind: input, shape index: {}]   ;;  %s1909_s1 = inlined_call_operand.hbm [shape: f32[256,128], index: 1, kind: input, shape index: {}]   ;;  %s1910_s2 = inlined_call_operand.hbm [shape: f32[8,128], index: 2, kind: output, shape index: {}]  }
   0x1   :  { %8 = vsyncpa [#allocation6], 0 }
   0x2   :  { %9 = vsyncpa [#allocation4], 0  ;;  %s1270_s9 = smov [#allocation2]   ;;  %s1271_s11 = smov [#allocation5]  }
   0x3   :  { %s16_s10 = sshll.u32 %s1270_s9, 4  ;;  %s25_s12 = sshll.u32 %s1271_s11, 4  ;;  %s17_s10 = int_to_ptr.vmem [resolvable:$true] %s16_s10  ;;  %s26_s12 = int_to_ptr.vmem [resolvable:$true] %s25_s12 }
   0x4   :  { %s1212_s13 = scalar_lea.vmem %s17_s10, 256  ;;  %p1217_p1 = scmp.lt.s32.totalorder %s17_s10, %s17_s10 }
   0x5   :  { %p1213_p0 = scmp.ne.s32.totalorder %s17_s10, %s1212_s13  ;;  %p1218_p2 = scmp.lt.s32.totalorder %s1212_s13, %s1212_s13 }
   0x7   :  { %p1219_p3 = por %p1218_p2, %p1217_p1 }
   0x9   :  { %p1220_p4 = pnand %p1219_p3, %p1213_p0 }
   0xb   :  { %1223 = shalt.err (!%p1220_p4)
}
   0xc   :  { %19 = dma.hbm_to_vmem [thread:$0]  %s1908_s0, 256, %s17_s10, [#allocation3]  }
   0xd   :  { %s1232_s16 = scalar_lea.vmem %s26_s12, 4096  ;;  %p1237_p6 = scmp.lt.s32.totalorder %s26_s12, %s26_s12 }
   0xe   :  { %p1233_p5 = scmp.ne.s32.totalorder %s26_s12, %s1232_s16  ;;  %p1238_p7 = scmp.lt.s32.totalorder %s1232_s16, %s1232_s16 }
  0x10   :  { %p1239_p8 = por %p1238_p7, %p1237_p6 }
  0x12   :  { %p1240_p9 = pnand %p1239_p8, %p1233_p5 }
  0x14   :  { %1243 = shalt.err (!%p1240_p9)
}
  0x15   :  { %s1272_s17 = smov 128   ;;  %s1273_s18 = smov 8  }
  0x16   :  { %31 = dma.hbm_to_vmem [thread:$0]  %s1909_s1, 4096, %s26_s12, [#allocation6], %s1272_s17, %s1272_s17, %s1273_s18  }
  0x17   :  { %1264 = dma.done.wait [#allocation3], 256  }
  0x18   :  { %1265 = vsyncadd [#allocation3], 4294967040 }
  0x19   :  { %1266 = dma.done.wait [#allocation6], 4096  }
  0x1a   :  { %1267 = vsyncadd [#allocation6], 4294963200  ;;  %v95_v0 = vld [vmem:[#allocation5 + $0xf8] sm:$0xff]  ;;  %v94_v2 = vld [vmem:[#allocation5 + $0xf0] sm:$0xff]  ;;  %s1274_s0 = smov [#allocation7]  }
  0x1b   :  { %v79_v1 = vld [vmem:[#allocation5 + $0x78] sm:$0xff]  ;;  %v1296_v3 = vand.u32 4294901760, %v95_v0  ;;  %v1300_v5 = vand.u32 4294901760, %v94_v2  ;;  %v78_v6 = vld [vmem:[#allocation5 + $0x70] sm:$0xff]  ;;  %v93_v7 = vld [vmem:[#allocation5 + $0xe8] sm:$0xff]  ;;  %s971_s1 = sshll.u32 %s1274_s0, 4  ;;  %s972_s1 = int_to_ptr.vmem [resolvable:$true] %s971_s1 }
  0x1c   :  { %v1298_v4 = vand.u32 4294901760, %v79_v1  ;;  %v77_v8 = vld [vmem:[#allocation5 + $0x68] sm:$0xff]  ;;  %v1302_v9 = vand.u32 4294901760, %v78_v6  ;;  %v1304_v10 = vand.u32 4294901760, %v93_v7  ;;  %v92_v12 = vld [vmem:[#allocation5 + $0xe0] sm:$0xff]  ;;  %v91_v14 = vld [vmem:[#allocation5 + $0xd8] sm:$0xff]  ;;  %p1249_p11 = scmp.lt.s32.totalorder %s972_s1, %s972_s1 }
  0x1d   :  { %v1306_v11 = vand.u32 4294901760, %v77_v8  ;;  %v76_v13 = vld [vmem:[#allocation5 + $0x60] sm:$0xff]  ;;  %981 = vmatprep.subr.mxu0 %v1296_v3  ;;  %v1309_v15 = vand.u32 4294901760, %v92_v12  ;;  %v1313_v17 = vand.u32 4294901760, %v91_v14  ;;  %v1316_v18 = vsub.f32 %v95_v0, %v1296_v3  ;;  %v1318_v19 = vld [vmem:[#allocation5 + $0x58] sm:$0xff]  ;;  %v1320_v20 = vld [vmem:[#allocation5 + $0xd0] sm:$0xff] }
  0x1e   :  { %v1311_v16 = vand.u32 4294901760, %v76_v13  ;;  %v1322_v21 = vld [vmem:[#allocation5 + $0x50] sm:$0xff]  ;;  %982 = vmatpush3.msra.mxu0 %v1298_v4  ;;  %v1326_v22 = vand.u32 4294901760, %v1318_v19  ;;  %v1329_v23 = vsub.f32 %v79_v1, %v1298_v4  ;;  %v1332_v24 = vand.u32 4294901760, %v1320_v20  ;;  %v1337_v26 = vld [vmem:[#allocation5 + $0xc8] sm:$0xff]  ;;  %v1341_v28 = vld [vmem:[#allocation5 + $0xc0] sm:$0xff] }
  0x1f   :  { %1984 = vst [vmem:[#allocation11_spill] sm:$0xff] %v1316_v18  ;;  %v1335_v25 = vsub.f32 %v94_v2, %v1300_v5  ;;  %v1339_v27 = vld [vmem:[#allocation5 + $0x48] sm:$0xff]  ;;  %983 = vmatprep.subr.mxu0 %v1300_v5  ;;  %v1924_v29 = vand.u32 4294901760, %v1316_v18  ;;  %v1346_v30 = vand.u32 4294901760, %v1322_v21  ;;  %v1349_v31 = vsub.f32 %v78_v6, %v1302_v9  ;;  %v1363_v37 = vld [vmem:[#allocation5 + $0x40] sm:$0xff]  ;;  %v1387_v46 = vld [vmem:[#allocation5 + $0xb8] sm:$0xff] }
  0x20   :  { %v1352_v32 = vand.u32 4294901760, %v1337_v26  ;;  %984 = vmatpush3.msra.mxu0 %v1302_v9  ;;  %v1922_v33 = vand.u32 4294901760, %v1329_v23  ;;  %v1358_v35 = vsub.f32 %v93_v7, %v1304_v10  ;;  %v1361_v36 = vand.u32 4294901760, %v1339_v27  ;;  %v1397_v51 = vld [vmem:[#allocation5 + $0x38] sm:$0xff]  ;;  %v1404_v56 = vld [vmem:[#allocation5 + $0xb0] sm:$0xff]  ;;  %v1428_v2 = vld [vmem:[#allocation5 + $0xa8] sm:$0xff] }
  0x21   :  { %v1921_v34 = vand.u32 4294901760, %v1335_v25  ;;  %985 = vmatprep.subr.mxu0 %v1304_v10  ;;  %v324_v38 = vsub.f32 %v1316_v18, %v1924_v29  ;;  %v1919_v39 = vand.u32 4294901760, %v1349_v31  ;;  %v1371_v40 = vsub.f32 %v77_v8, %v1306_v11  ;;  %v1416_v61 = vld [vmem:[#allocation5 + $0x30] sm:$0xff]  ;;  %s1244_s21 = scalar_lea.vmem %s972_s1, 128 }
  0x22   :  { %v1374_v41 = vand.u32 4294901760, %v1341_v28  ;;  %986 = vmatpush3.msra.mxu0 %v1306_v11  ;;  %v212_v42 = vsub.f32 %v1329_v23, %v1922_v33  ;;  %v1917_v44 = vand.u32 4294901760, %v1358_v35  ;;  %v1385_v45 = vsub.f32 %v92_v12, %v1309_v15  ;;  %p1245_p10 = scmp.ne.s32.totalorder %s972_s1, %s1244_s21  ;;  %p1250_p12 = scmp.lt.s32.totalorder %s1244_s21, %s1244_s21 }
  0x23   :  { %v331_v43 = vsub.f32 %v1335_v25, %v1921_v34  ;;  %987 = vmatprep.subr.mxu0 %v1309_v15  ;;  %v325_v47 = vand.u32 4294901760, %v324_v38  ;;  %v219_v48 = vsub.f32 %v1349_v31, %v1919_v39  ;;  %v1916_v49 = vand.u32 4294901760, %v1371_v40  ;;  %v1519_v39 = vld [vmem:[#allocation5 + $0x90] sm:$0xff] }
  0x24   :  { %v1395_v50 = vand.u32 4294901760, %v1363_v37  ;;  %988 = vmatpush3.msra.mxu0 %v1311_v16  ;;  %v213_v52 = vand.u32 4294901760, %v212_v42  ;;  %v338_v54 = vsub.f32 %v1358_v35, %v1917_v44  ;;  %v1914_v55 = vand.u32 4294901760, %v1385_v45  ;;  %v1529_v34 = vld [vmem:[#allocation5 + $0x10] sm:$0xff]  ;;  %p1251_p13 = por %p1250_p12, %p1249_p11 }
  0x25   :  { %v332_v53 = vand.u32 4294901760, %v331_v43  ;;  %989 = vmatprep.subr.mxu0 %v1313_v17  ;;  %1016 = vmatprep.subr.mxu1 %v325_v47  ;;  %v220_v57 = vand.u32 4294901760, %v219_v48  ;;  %v226_v58 = vsub.f32 %v1371_v40, %v1916_v49  ;;  %v1411_v59 = vsub.f32 %v76_v13, %v1311_v16  ;;  %v1439_v13 = vld [vmem:[#allocation5 + $0x28] sm:$0xff]  ;;  %v1506_v49 = vld [vmem:[#allocation5 + $0x18] sm:$0xff] }
  0x26   :  { %v1414_v60 = vand.u32 4294901760, %v1387_v46  ;;  %990 = vmatpush3.msra.mxu0 %v1326_v22  ;;  %1017 = vmatpush3.msra.mxu1 %v213_v52  ;;  %v339_v62 = vand.u32 4294901760, %v338_v54  ;;  %v345_v63 = vsub.f32 %v1385_v45, %v1914_v55  ;;  %v1423_v0 = vsub.f32 %v91_v14, %v1313_v17  ;;  %p1252_p0 = pnand %p1251_p13, %p1245_p10 }
  0x27   :  { %v1426_v1 = vand.u32 4294901760, %v1397_v51  ;;  %991 = vmatprep.subr.mxu0 %v1332_v24  ;;  %1018 = vmatprep.subr.mxu1 %v332_v53  ;;  %v227_v6 = vand.u32 4294901760, %v226_v58  ;;  %v1912_v7 = vand.u32 4294901760, %v1411_v59  ;;  %v1434_v8 = vsub.f32 %v1318_v19, %v1326_v22 }
  0x28   :  { %v1437_v12 = vand.u32 4294901760, %v1404_v56  ;;  %992 = vmatpush3.msra.mxu0 %v1346_v30  ;;  %1019 = vmatpush3.msra.mxu1 %v220_v57  ;;  %v346_v14 = vand.u32 4294901760, %v345_v63  ;;  %v1911_v38 = vand.u32 4294901760, %v1423_v0  ;;  %v1445_v42 = vsub.f32 %v1320_v20, %v1332_v24  ;;  %v1462_v20 = vld [vmem:[#allocation5 + $0xa0] sm:$0xff] }
  0x29   :  { %v1448_v43 = vand.u32 4294901760, %v1416_v61  ;;  %993 = vmatprep.subr.mxu0 %v1352_v32  ;;  %1020 = vmatprep.subr.mxu1 %v339_v62  ;;  %v233_v19 = vsub.f32 %v1411_v59, %v1912_v7  ;;  %v1913_v47 = vand.u32 4294901760, %v1434_v8  ;;  %v1457_v48 = vsub.f32 %v1322_v21, %v1346_v30 }
  0x2a   :  { %1985 = vst [vmem:[#allocation12_spill] sm:$0xff] %v1437_v12  ;;  %v1460_v52 = vand.u32 4294901760, %v1428_v2  ;;  %994 = vmatpush3.msra.mxu0 %v1361_v36  ;;  %1021 = vmatpush3.msra.mxu1 %v227_v6  ;;  %v352_v53 = vsub.f32 %v1423_v0, %v1911_v38  ;;  %v1915_v54 = vand.u32 4294901760, %v1445_v42  ;;  %v1471_v57 = vsub.f32 %v1337_v26, %v1352_v32  ;;  %v1485_v38 = vld [vmem:[#allocation5 + $0x20] sm:$0xff] }
  0x2b   :  { %1986 = vst [vmem:[#allocation13_spill] sm:$0xff] %v1448_v43  ;;  %1987 = vst [vmem:[#allocation14_spill] sm:$0xff] %v1457_v48  ;;  %v1474_v21 = vand.u32 4294901760, %v1439_v13  ;;  %995 = vmatprep.subr.mxu0 %v1374_v41  ;;  %1022 = vmatprep.subr.mxu1 %v346_v14  ;;  %v234_v58 = vand.u32 4294901760, %v233_v19  ;;  %v240_v62 = vsub.f32 %v1434_v8, %v1913_v47  ;;  %v1918_v63 = vand.u32 4294901760, %v1457_v48  ;;  %v1495_v47 = vld [vmem:[#allocation5 + $0x98] sm:$0xff] }
  0x2c   :  { %1988 = vst [vmem:[#allocation15_spill] sm:$0xff] %v1460_v52  ;;  %1989 = vst [vmem:[#allocation16_spill] sm:$0xff] %v1471_v57  ;;  %v1483_v6 = vsub.f32 %v1339_v27, %v1361_v36  ;;  %996 = vmatpush3.msra.mxu0 %v1395_v50  ;;  %v353_v26 = vand.u32 4294901760, %v352_v53  ;;  %v359_v14 = vsub.f32 %v1445_v42, %v1915_v54  ;;  %v1920_v19 = vand.u32 4294901760, %v1471_v57 }
  0x2d   :  { %1990 = vst [vmem:[#allocation17_spill] sm:$0xff] %v1474_v21  ;;  %v1493_v7 = vand.u32 4294901760, %v1462_v20  ;;  %1023 = vmatpush3.msra.mxu1 %v234_v58  ;;  %997 = vmatprep.subr.mxu0 %v1414_v60  ;;  %v241_v27 = vand.u32 4294901760, %v240_v62  ;;  %v247_v55 = vsub.f32 %v1457_v48, %v1918_v63  ;;  %v1504_v54 = vsub.f32 %v1341_v28, %v1374_v41 }
  0x2e   :  { %1991 = vst [vmem:[#allocation18_spill] sm:$0xff] %v1483_v6  ;;  %v1923_v53 = vand.u32 4294901760, %v1483_v6  ;;  %1024 = vmatprep.subr.mxu1 %v353_v26  ;;  %998 = vmatpush3.msra.mxu0 %v1426_v1  ;;  %v360_v44 = vand.u32 4294901760, %v359_v14  ;;  %v366_v58 = vsub.f32 %v1471_v57, %v1920_v19  ;;  %v1513_v62 = vand.u32 4294901760, %v1485_v38 }
  0x2f   :  { %1992 = vst [vmem:[#allocation19_spill] sm:$0xff] %v1504_v54  ;;  %v1517_v63 = vsub.f32 %v1363_v37, %v1395_v50  ;;  %1025 = vmatpush3.msra.mxu1 %v241_v27  ;;  %999 = vmatprep.subr.mxu0 %v1437_v12  ;;  %v248_v28 = vand.u32 4294901760, %v247_v55  ;;  %v1927_v14 = vand.u32 4294901760, %v1504_v54  ;;  %v1527_v19 = vand.u32 4294901760, %v1495_v47 }
  0x30   :  { %v254_v26 = vsub.f32 %v1483_v6, %v1923_v53  ;;  %1026 = vmatprep.subr.mxu1 %v360_v44  ;;  %1000 = vmatpush3.msra.mxu0 %v1448_v43  ;;  %v367_v37 = vand.u32 4294901760, %v366_v58  ;;  %v1535_v55 = vsub.f32 %v1387_v46, %v1414_v60  ;;  %v1538_v33 = vand.u32 4294901760, %v1506_v49  ;;  %v1540_v53 = vld [vmem:[#allocation5 + $0x88] sm:$0xff] }
  0x31   :  { %1993 = vst [vmem:[#allocation20_spill] sm:$0xff] %v1517_v63  ;;  %v1930_v27 = vand.u32 4294901760, %v1517_v63  ;;  %1027 = vmatpush3.msra.mxu1 %v248_v28  ;;  %1001 = vmatprep.subr.mxu0 %v1460_v52  ;;  %v373_v44 = vsub.f32 %v1504_v54, %v1927_v14  ;;  %v1548_v58 = vsub.f32 %v1397_v51, %v1426_v1  ;;  %v1551_v46 = vand.u32 4294901760, %v1519_v39  ;;  %v1565_v51 = vld [vmem:[#allocation5 + $0x8] sm:$0xff] }
  0x32   :  { %1994 = vst [vmem:[#allocation21_spill] sm:$0xff] %v1535_v55  ;;  %v255_v29 = vand.u32 4294901760, %v254_v26  ;;  %1028 = vmatprep.subr.mxu1 %v367_v37  ;;  %1002 = vmatpush3.msra.mxu0 %v1474_v21  ;;  %v1560_v6 = vsub.f32 %v1404_v56, %v1437_v12  ;;  %v1563_v14 = vand.u32 4294901760, %v1529_v34  ;;  %v1574_v26 = vand.u32 4294901760, %v1540_v53  ;;  %v1576_v56 = vld [vmem:[#allocation5 + $0x80] sm:$0xff] }
  0x33   :  { %1995 = vst [vmem:[#allocation22_spill] sm:$0xff] %v1548_v58  ;;  %v261_v28 = vsub.f32 %v1517_v63, %v1930_v27  ;;  %1003 = vmatprep.subr.mxu0 %v1493_v7  ;;  %v374_v37 = vand.u32 4294901760, %v373_v44  ;;  %v1571_v27 = vsub.f32 %v1416_v61, %v1448_v43  ;;  %v1998_v57 = vand.u32 4294901760, %v1535_v55  ;;  %v1599_v44 = vld [vmem:[#allocation5] sm:$0xff] }
  0x34   :  { %1996 = vst [vmem:[#allocation23_spill] sm:$0xff] %v1560_v6  ;;  %1029 = vmatpush3.msra.mxu1 %v255_v29  ;;  %1004 = vmatpush3.msra.mxu0 %v1513_v62  ;;  %v1585_v54 = vsub.f32 %v1428_v2, %v1460_v52  ;;  %v2000_v61 = vand.u32 4294901760, %v1548_v58  ;;  %v1607_v48 = vand.u32 4294901760, %v1576_v56  ;;  %v1623_v12 = vand.u32 4294901760, %v1599_v44 }
  0x35   :  { %1997 = vst [vmem:[#allocation24_spill] sm:$0xff] %v1571_v27  ;;  %v262_v63 = vand.u32 4294901760, %v261_v28  ;;  %v380_v29 = vsub.f32 %v1535_v55, %v1998_v57  ;;  %1030 = vmatprep.subr.mxu1 %v374_v37  ;;  %1005 = vmatprep.subr.mxu0 %v1527_v19  ;;  %v1593_v28 = vand.u32 4294901760, %v1565_v51  ;;  %v1597_v57 = vsub.f32 %v1439_v13, %v1474_v21 }
  0x36   :  { %1999 = vst [vmem:[#allocation25_spill] sm:$0xff] %v1585_v54  ;;  %v268_v43 = vsub.f32 %v1548_v58, %v2000_v61  ;;  %1006 = vmatpush3.msra.mxu0 %v1538_v33  ;;  %v2001_v37 = vand.u32 4294901760, %v1560_v6  ;;  %2002 = vst [vmem:[#allocation26_spill] sm:$0xff] %v1607_v48  ;;  %v39_v58 = vld [vmem:[#allocation2 + $0x8] sm:$0xff]  ;;  %v2003_v13 = vand.u32 4294901760, %v1571_v27  ;;  %v1616_v21 = vsub.f32 %v1462_v20, %v1493_v7 }
  0x37   :  { %1031 = vmatpush3.msra.mxu1 %v262_v63  ;;  %v381_v2 = vand.u32 4294901760, %v380_v29  ;;  %1007 = vmatprep.subr.mxu0 %v1551_v46  ;;  %2005 = vst [vmem:[#allocation27_spill] sm:$0xff] %v1623_v12  ;;  %v2006_v20 = vand.u32 4294901760, %v1597_v57 }
  0x38   :  { %v387_v55 = vsub.f32 %v1560_v6, %v2001_v37  ;;  %v269_v52 = vand.u32 4294901760, %v268_v43  ;;  %v275_v63 = vsub.f32 %v1571_v27, %v2003_v13  ;;  %v38_v37 = vld [vmem:[#allocation2] sm:$0xff]  ;;  %1008 = vmatpush3.msra.mxu0 %v1563_v14  ;;  %v2004_v6 = vand.u32 4294901760, %v1585_v54 }
  0x39   :  { %1032 = vmatprep.subr.mxu1 %v381_v2  ;;  %v1627_v13 = vsub.f32 %v1485_v38, %v1513_v62  ;;  %1009 = vmatprep.subr.mxu0 %v1574_v26  ;;  %v1957_v2 = vand.u32 4294901760, %v1616_v21  ;;  %v1634_v27 = vmax.f32 %v39_v58, 1e-06  ;;  %v1640_v38 = vsub.f32 %v1495_v47, %v1527_v19 }
  0x3a   :  { %v388_v61 = vand.u32 4294901760, %v387_v55  ;;  %v394_v43 = vsub.f32 %v1585_v54, %v2004_v6  ;;  %1033 = vmatpush3.msra.mxu1 %v269_v52  ;;  %v276_v29 = vand.u32 4294901760, %v275_v63  ;;  %v282_v55 = vsub.f32 %v1597_v57, %v2006_v20  ;;  %1010 = vmatpush3.msra.mxu0 %v1593_v28 }
  0x3b   :  { %v1956_v54 = vand.u32 4294901760, %v1627_v13  ;;  %2007 = vst [vmem:[#allocation28_spill] sm:$0xff] %v1640_v38  ;;  %v1642_v52 = vmax.f32 %v38_v37, 1e-06  ;;  %1011 = vmatprep.subr.mxu0 %v1607_v48  ;;  %v401_v58 = vsub.f32 %v1616_v21, %v1957_v2  ;;  %1196 = vrsqrt.f32 %v1634_v27 }
  0x3c   :  { %1034 = vmatprep.subr.mxu1 %v388_v61  ;;  %v395_v6 = vand.u32 4294901760, %v394_v43  ;;  %v283_v63 = vand.u32 4294901760, %v282_v55  ;;  %1012 = vmatpush3.msra.mxu0 %v1623_v12  ;;  %v1661_v20 = vsub.f32 %v1506_v49, %v1538_v33  ;;  %v1665_v55 = vsub.f32 %v1519_v39, %v1551_v46 }
  0x3d   :  { %1035 = vmatpush3.msra.mxu1 %v276_v29  ;;  %v289_v47 = vsub.f32 %v1627_v13, %v1956_v54  ;;  %v402_v61 = vand.u32 4294901760, %v401_v58  ;;  %v1955_v29 = vand.u32 4294901760, %v1640_v38  ;;  %1051 = vmatprep.subr.mxu0 %v1316_v18  ;;  %1198 = vrsqrt.f32 %v1642_v52 }
  0x3e   :  { %1036 = vmatprep.subr.mxu1 %v395_v6  ;;  %2008 = vst [vmem:[#allocation29_spill] sm:$0xff] %v1661_v20  ;;  %2009 = vst [vmem:[#allocation30_spill] sm:$0xff] %v1665_v55  ;;  %v1669_v6 = vsub.f32 %v1529_v34, %v1563_v14  ;;  %v43_v58 = vmul.f32 %v1634_v27, %v1634_v27  ;;  %v1679_v49 = vsub.f32 %v1565_v51, %v1593_v28 }
  0x3f   :  { %1037 = vmatpush3.msra.mxu1 %v283_v63  ;;  %v290_v37 = vand.u32 4294901760, %v289_v47  ;;  %v408_v43 = vsub.f32 %v1640_v38, %v1955_v29  ;;  %v1673_v63 = vsub.f32 %v1540_v53, %v1574_v26  ;;  %v1683_v39 = vsub.f32 %v1576_v56, %v1607_v48 }
  0x40   :  { %1038 = vmatprep.subr.mxu1 %v402_v61  ;;  %2010 = vst [vmem:[#allocation31_spill] sm:$0xff] %v1669_v6  ;;  %2012 = vst [vmem:[#allocation33_spill] sm:$0xff] %v1679_v49  ;;  %v1961_v61 = vand.u32 4294901760, %v1661_v20  ;;  %v1964_v34 = vand.u32 4294901760, %v1665_v55  ;;  %v1695_v56 = vsub.f32 %v1599_v44, %v1623_v12  ;;  %v45_v29 = vmul.f32 %v43_v58, %v43_v58 }
  0x41   :  { %1039 = vmatpush3.msra.mxu1 %v290_v37  ;;  %2011 = vst [vmem:[#allocation32_spill] sm:$0xff] %v1673_v63  ;;  %v409_v47 = vand.u32 4294901760, %v408_v43  ;;  %v1971_v37 = vand.u32 4294901760, %v1669_v6  ;;  %v1972_v53 = vand.u32 4294901760, %v1673_v63  ;;  %v42_v43 = vmul.f32 %v1642_v52, %v1642_v52 }
  0x42   :  { %2013 = vst [vmem:[#allocation34_spill] sm:$0xff] %v1695_v56  ;;  %v296_v54 = vsub.f32 %v1661_v20, %v1961_v61  ;;  %v415_v2 = vsub.f32 %v1665_v55, %v1964_v34  ;;  %v2014_v44 = vand.u32 4294901760, %v1679_v49  ;;  %v2015_v12 = vand.u32 4294901760, %v1683_v39 }
  0x43   :  { %1040 = vmatprep.subr.mxu1 %v409_v47  ;;  %v303_v47 = vsub.f32 %v1669_v6, %v1971_v37  ;;  %v422_v51 = vsub.f32 %v1673_v63, %v1972_v53  ;;  %v1979_v20 = vand.u32 4294901760, %v1695_v56  ;;  %vm57_vm0 = vcmp.eq.f32.partialorder %v1634_v27, inf }
  0x44   :  { %v310_v18 = vsub.f32 %v1679_v49, %v2014_v44  ;;  %v429_v61 = vsub.f32 %v1683_v39, %v2015_v12  ;;  %v297_v34 = vand.u32 4294901760, %v296_v54  ;;  %v416_v55 = vand.u32 4294901760, %v415_v2 }
  0x45   :  { %v304_v38 = vand.u32 4294901760, %v303_v47  ;;  %v423_v48 = vand.u32 4294901760, %v422_v51  ;;  %v317_v37 = vsub.f32 %v1695_v56, %v1979_v20  ;;  %v60_v63 = vand.u32 2147483648, %v1634_v27 }
  0x46   :  { %v44_v44 = vmul.f32 %v42_v43, %v42_v43  ;;  %1041 = vmatpush3.msra.mxu1 %v297_v34  ;;  %v311_v49 = vand.u32 4294901760, %v310_v18  ;;  %v47_v6 = vmul.f32 %v45_v29, %v43_v58  ;;  %vm59_vm1 = vcmp.eq.f32.partialorder %v1634_v27, 0.0 }
  0x47   :  { %1042 = vmatprep.subr.mxu1 %v416_v55  ;;  %v430_v54 = vand.u32 4294901760, %v429_v61  ;;  %v318_v2 = vand.u32 4294901760, %v317_v37  ;;  %vm50_vm2 = vcmp.eq.f32.partialorder %v1642_v52, inf  ;;  %v53_v20 = vand.u32 2147483648, %v1642_v52 }
  0x48   :  { %v1197_v53 = vpop.eup %1196  ;;  %1043 = vmatpush3.msra.mxu1 %v304_v38  ;;  %v46_v34 = vmul.f32 %v44_v44, %v42_v43  ;;  %vm52_vm3 = vcmp.eq.f32.partialorder %v1642_v52, 0.0  ;;  %v2017_v43 = vld [vmem:[#allocation12_spill] sm:$0xff]  ;;  %v2019_v44 = vld [vmem:[#allocation13_spill] sm:$0xff] }
  0x49   :  { %v56_v12 = vmul.f32 %v1197_v53, %v1634_v27  ;;  %1044 = vmatprep.subr.mxu1 %v423_v48 }
  0x4a   :  { %v1199_v51 = vpop.eup %1198  ;;  %1045 = vmatpush3.msra.mxu1 %v311_v49 }
  0x4b   :  { %v58_v47 = vsel %vm57_vm0, %v1634_v27, %v56_v12  ;;  %v49_v18 = vmul.f32 %v1199_v51, %v1642_v52  ;;  %1046 = vmatprep.subr.mxu1 %v430_v54  ;;  %v2020_v12 = vld [vmem:[#allocation16_spill] sm:$0xff]  ;;  %v2021_v54 = vld [vmem:[#allocation15_spill] sm:$0xff]  ;;  %v2023_v51 = vld [vmem:[#allocation17_spill] sm:$0xff] }
  0x4c   :  { %v61_v56 = vsel %vm59_vm1, %v60_v63, %v58_v47  ;;  %1047 = vmatpush3.msra.mxu1 %v318_v2  ;;  %v2022_v2 = vld [vmem:[#allocation18_spill] sm:$0xff]  ;;  %v2024_v47 = vld [vmem:[#allocation19_spill] sm:$0xff] }
  0x4d   :  { %v63_v29 = vmul.f32 %v61_v56, %v47_v6  ;;  %v51_v38 = vsel %vm50_vm2, %v1642_v52, %v49_v18  ;;  %1086 = vmatprep.subr.mxu1 %v1296_v3  ;;  %v2018_v56 = vld [vmem:[#allocation14_spill] sm:$0xff]  ;;  %v2026_v18 = vld [vmem:[#allocation21_spill] sm:$0xff] }
  0x4e   :  { %v54_v27 = vsel %vm52_vm3, %v53_v20, %v51_v38  ;;  %v2028_v38 = vld [vmem:[#allocation23_spill] sm:$0xff] }
  0x4f   :  { %v1729_v55 = vand.u32 4294901760, %v63_v29  ;;  %v62_v58 = vmul.f32 %v54_v27, %v46_v34  ;;  %v2025_v34 = vld [vmem:[#allocation20_spill] sm:$0xff] }
  0x50   :  { %v2029_v27 = vld [vmem:[#allocation24_spill] sm:$0xff] }
  0x51   :  { %v193_v48 = vsub.f32 %v63_v29, %v1729_v55  ;;  %433 = vmatprep.mubr.f32.mxu1 %v1729_v55  ;;  %v1734_v63 = vand.u32 4294901760, %v62_v58  ;;  %v2027_v29 = vld [vmem:[#allocation22_spill] sm:$0xff] }
  0x53   :  { %2016 = vst [vmem:[#allocation35_spill] sm:$0xff] %v1734_v63  ;;  %v194_v61 = vand.u32 4294901760, %v193_v48  ;;  %v1737_v49 = vsub.f32 %v62_v58, %v1734_v63  ;;  %435 = vmatmul.mubr.f32.vlgmr.msra.gmra.mxu1 %v1734_v63  ;;  %v2030_v58 = vld [vmem:[#allocation25_spill] sm:$0xff]  ;;  %v2037_v63 = vld [vmem:[#allocation32_spill] sm:$0xff] }
  0x54   :  { %1087 = vmatpush3.msra.mxu1 %v1298_v4 }
  0x55   :  { %v195_v52 = vsub.f32 %v193_v48, %v194_v61  ;;  %677 = vmatprep.mubr.f32.mxu1 %v194_v61  ;;  %v200_v20 = vand.u32 4294901760, %v1737_v49  ;;  %1088 = vmatprep.subr.mxu1 %v1300_v5  ;;  %v2032_v61 = vld [vmem:[#allocation28_spill] sm:$0xff] }
  0x56   :  { %1089 = vmatpush3.msra.mxu1 %v1302_v9 }
  0x57   :  { %v196_v6 = vand.u32 4294901760, %v195_v52  ;;  %v201_v37 = vsub.f32 %v1737_v49, %v200_v20  ;;  %1090 = vmatprep.subr.mxu1 %v1304_v10  ;;  %v2033_v52 = vld [vmem:[#allocation27_spill] sm:$0xff] }
  0x58   :  { %1091 = vmatpush3.msra.mxu1 %v1306_v11 }
  0x59   :  { %197 = vmatprep.mubr.f32.mxu0 %v196_v6  ;;  %v202_v53 = vand.u32 4294901760, %v201_v37  ;;  %1092 = vmatprep.subr.mxu1 %v1309_v15  ;;  %v2034_v6 = vld [vmem:[#allocation29_spill] sm:$0xff]  ;;  %v2035_v37 = vld [vmem:[#allocation30_spill] sm:$0xff] }
  0x5a   :  { %1093 = vmatpush3.msra.mxu1 %v1311_v16 }
  0x5b   :  { %203 = vmatmul.mubr.f32.vlgmr.msra.gmra.mxu0 %v202_v53  ;;  %1094 = vmatprep.subr.mxu1 %v1313_v17  ;;  %v2036_v53 = vld [vmem:[#allocation31_spill] sm:$0xff] }
  0x5c   :  { %1052 = vmatpush3.msra.mxu0 %v1329_v23  ;;  %1095 = vmatpush3.msra.mxu1 %v1326_v22 }
  0x5d   :  { %1053 = vmatprep.subr.mxu0 %v1335_v25  ;;  %1096 = vmatprep.subr.mxu1 %v1332_v24 }
  0x5e   :  { %1054 = vmatpush3.msra.mxu0 %v1349_v31  ;;  %1097 = vmatpush3.msra.mxu1 %v1346_v30 }
  0x5f   :  { %1055 = vmatprep.subr.mxu0 %v1358_v35  ;;  %1098 = vmatprep.subr.mxu1 %v1352_v32 }
  0x60   :  { %1056 = vmatpush3.msra.mxu0 %v1371_v40  ;;  %1099 = vmatpush3.msra.mxu1 %v1361_v36 }
  0x61   :  { %1057 = vmatprep.subr.mxu0 %v1385_v45  ;;  %1100 = vmatprep.subr.mxu1 %v1374_v41 }
  0x62   :  { %1058 = vmatpush3.msra.mxu0 %v1411_v59  ;;  %1101 = vmatpush3.msra.mxu1 %v1395_v50 }
  0x63   :  { %1059 = vmatprep.subr.mxu0 %v1423_v0  ;;  %1102 = vmatprep.subr.mxu1 %v1414_v60 }
  0x64   :  { %1060 = vmatpush3.msra.mxu0 %v1434_v8  ;;  %1103 = vmatpush3.msra.mxu1 %v1426_v1 }
  0x65   :  { %1061 = vmatprep.subr.mxu0 %v1445_v42  ;;  %1104 = vmatprep.subr.mxu1 %v2017_v43 }
  0x66   :  { %1062 = vmatpush3.msra.mxu0 %v2018_v56  ;;  %1105 = vmatpush3.msra.mxu1 %v2019_v44 }
  0x67   :  { %1063 = vmatprep.subr.mxu0 %v2020_v12  ;;  %1106 = vmatprep.subr.mxu1 %v2021_v54 }
  0x68   :  { %1064 = vmatpush3.msra.mxu0 %v2022_v2  ;;  %1107 = vmatpush3.msra.mxu1 %v2023_v51 }
  0x69   :  { %1065 = vmatprep.subr.mxu0 %v2024_v47  ;;  %1108 = vmatprep.subr.mxu1 %v1493_v7 }
  0x6a   :  { %1066 = vmatpush3.msra.mxu0 %v2025_v34  ;;  %570 = vmatprep.mubr.f32.mxu0 %v193_v48  ;;  %v2031_v48 = vld [vmem:[#allocation26_spill] sm:$0xff] }
  0x6b   :  { %1067 = vmatprep.subr.mxu0 %v2026_v18  ;;  %1109 = vmatpush3.msra.mxu1 %v1513_v62 }
  0x6c   :  { %1068 = vmatpush3.msra.mxu0 %v2027_v29  ;;  %1110 = vmatprep.subr.mxu1 %v1527_v19 }
  0x6d   :  { %1069 = vmatprep.subr.mxu0 %v2028_v38  ;;  %1111 = vmatpush3.msra.mxu1 %v1538_v33 }
  0x6e   :  { %1070 = vmatpush3.msra.mxu0 %v2029_v27  ;;  %1112 = vmatprep.subr.mxu1 %v1551_v46 }
  0x6f   :  { %1071 = vmatprep.subr.mxu0 %v2030_v58  ;;  %1113 = vmatpush3.msra.mxu1 %v1563_v14 }
  0x70   :  { %1072 = vmatpush3.msra.mxu0 %v1597_v57  ;;  %1114 = vmatprep.subr.mxu1 %v1574_v26 }
  0x71   :  { %1073 = vmatprep.subr.mxu0 %v1616_v21  ;;  %1115 = vmatpush3.msra.mxu1 %v1593_v28 }
  0x72   :  { %1074 = vmatpush3.msra.mxu0 %v1627_v13  ;;  %1116 = vmatprep.subr.mxu1 %v2031_v48  ;;  %v2038_v48 = vld [vmem:[#allocation33_spill] sm:$0xff] }
  0x73   :  { %1075 = vmatprep.subr.mxu0 %v2032_v61  ;;  %1117 = vmatpush3.msra.mxu1 %v2033_v52 }
  0x74   :  { %1076 = vmatpush3.msra.mxu0 %v2034_v6  ;;  %681 = vmatmul.mubr.f32.vlgmr.msra.gmra.mxu1 %v200_v20  ;;  %v2039_v20 = vld [vmem:[#allocation34_spill] sm:$0xff] }
  0x75   :  { %1077 = vmatprep.subr.mxu0 %v2035_v37  ;;  %1156 = vmatprep.subr.mxu1 %v1296_v3  ;;  %v2040_v3 = vld [vmem:[#allocation11_spill] sm:$0xff] }
  0x76   :  { %1078 = vmatpush3.msra.mxu0 %v2036_v53  ;;  %1157 = vmatpush3.msra.mxu1 %v1298_v4  ;;  %v2041_v4 = vand.u32 4294901760, %v2040_v3 }
  0x77   :  { %1079 = vmatprep.subr.mxu0 %v2037_v63  ;;  %1158 = vmatprep.subr.mxu1 %v1300_v5  ;;  %v2042_v63 = vand.u32 4294901760, %v1329_v23  ;;  %v2043_v5 = vand.u32 4294901760, %v1335_v25  ;;  %v2051_v23 = vand.u32 4294901760, %v1445_v42  ;;  %v2053_v25 = vand.u32 4294901760, %v2020_v12  ;;  %v2070_v42 = vld [vmem:[#allocation32_spill] sm:$0xff] }
  0x78   :  { %1080 = vmatpush3.msra.mxu0 %v2038_v48  ;;  %1159 = vmatpush3.msra.mxu1 %v1302_v9  ;;  %v2044_v9 = vand.u32 4294901760, %v1349_v31  ;;  %v2055_v31 = vand.u32 4294901760, %v2024_v47 }
  0x79   :  { %1081 = vmatprep.subr.mxu0 %v1683_v39  ;;  %1160 = vmatprep.subr.mxu1 %v1304_v10  ;;  %v2045_v10 = vand.u32 4294901760, %v1358_v35  ;;  %v2057_v35 = vand.u32 4294901760, %v2026_v18 }
  0x7a   :  { %1082 = vmatpush3.msra.mxu0 %v2039_v20  ;;  %1161 = vmatpush3.msra.mxu1 %v1306_v11  ;;  %v2046_v11 = vand.u32 4294901760, %v1371_v40  ;;  %v2059_v40 = vand.u32 4294901760, %v2028_v38 }
  0x7b   :  { %573 = vmatmul.mubr.f32.vlgmr.msra.gmra.mxu0 %v1737_v49  ;;  %1121 = vmatprep.subr.mxu0 %v2041_v4 }
  0x7c   :  { %1122 = vmatpush3.msra.mxu0 %v2042_v63  ;;  %1162 = vmatprep.subr.mxu1 %v1309_v15  ;;  %v2047_v15 = vand.u32 4294901760, %v1385_v45  ;;  %v2061_v45 = vand.u32 4294901760, %v2030_v58 }
  0x7d   :  { %1123 = vmatprep.subr.mxu0 %v2043_v5  ;;  %1163 = vmatpush3.msra.mxu1 %v1311_v16  ;;  %v2048_v16 = vand.u32 4294901760, %v1411_v59  ;;  %v2063_v59 = vand.u32 4294901760, %v1616_v21  ;;  %v2071_v21 = vand.u32 4294901760, %v2070_v42 }
  0x7e   :  { %1124 = vmatpush3.msra.mxu0 %v2044_v9  ;;  %1164 = vmatprep.subr.mxu1 %v1313_v17  ;;  %v2049_v17 = vand.u32 4294901760, %v1423_v0  ;;  %v2065_v0 = vand.u32 4294901760, %v2032_v61 }
  0x7f   :  { %1125 = vmatprep.subr.mxu0 %v2045_v10  ;;  %1165 = vmatpush3.msra.mxu1 %v1326_v22  ;;  %v2050_v22 = vand.u32 4294901760, %v1434_v8  ;;  %v2069_v8 = vand.u32 4294901760, %v2036_v53 }
  0x80   :  { %1126 = vmatpush3.msra.mxu0 %v2046_v11  ;;  %1166 = vmatprep.subr.mxu1 %v1332_v24  ;;  %v2052_v24 = vand.u32 4294901760, %v2018_v56 }
  0x81   :  { %1127 = vmatprep.subr.mxu0 %v2047_v15  ;;  %1167 = vmatpush3.msra.mxu1 %v1346_v30  ;;  %v2054_v30 = vand.u32 4294901760, %v2022_v2 }
  0x82   :  { %1128 = vmatpush3.msra.mxu0 %v2048_v16  ;;  %1168 = vmatprep.subr.mxu1 %v1352_v32  ;;  %v2056_v32 = vand.u32 4294901760, %v2025_v34 }
  0x83   :  { %1129 = vmatprep.subr.mxu0 %v2049_v17  ;;  %1169 = vmatpush3.msra.mxu1 %v1361_v36  ;;  %v2058_v36 = vand.u32 4294901760, %v2027_v29 }
  0x84   :  { %1130 = vmatpush3.msra.mxu0 %v2050_v22  ;;  %1170 = vmatprep.subr.mxu1 %v1374_v41  ;;  %v2060_v41 = vand.u32 4294901760, %v2029_v27 }
  0x85   :  { %1131 = vmatprep.subr.mxu0 %v2051_v23  ;;  %1171 = vmatpush3.msra.mxu1 %v1395_v50  ;;  %v2062_v50 = vand.u32 4294901760, %v1597_v57 }
  0x86   :  { %1132 = vmatpush3.msra.mxu0 %v2052_v24  ;;  %1172 = vmatprep.subr.mxu1 %v1414_v60  ;;  %v2064_v60 = vand.u32 4294901760, %v1627_v13 }
  0x87   :  { %1133 = vmatprep.subr.mxu0 %v2053_v25  ;;  %1173 = vmatpush3.msra.mxu1 %v1426_v1  ;;  %v2066_v1 = vand.u32 4294901760, %v2034_v6 }
  0x88   :  { %1134 = vmatpush3.msra.mxu0 %v2054_v30  ;;  %1174 = vmatprep.subr.mxu1 %v2017_v43 }
  0x89   :  { %1135 = vmatprep.subr.mxu0 %v2055_v31  ;;  %1175 = vmatpush3.msra.mxu1 %v2019_v44 }
  0x8a   :  { %1136 = vmatpush3.msra.mxu0 %v2056_v32  ;;  %1176 = vmatprep.subr.mxu1 %v2021_v54 }
  0x8b   :  { %1137 = vmatprep.subr.mxu0 %v2057_v35  ;;  %1177 = vmatpush3.msra.mxu1 %v2023_v51 }
  0x8c   :  { %1138 = vmatpush3.msra.mxu0 %v2058_v36  ;;  %1178 = vmatprep.subr.mxu1 %v1493_v7  ;;  %v2068_v7 = vld [vmem:[#allocation26_spill] sm:$0xff] }
  0x8d   :  { %1139 = vmatprep.subr.mxu0 %v2059_v40  ;;  %847 = vmatprep.mubr.f32.mxu0 %v1729_v55 }
  0x8e   :  { %1140 = vmatpush3.msra.mxu0 %v2060_v41  ;;  %1179 = vmatpush3.msra.mxu1 %v1513_v62  ;;  %v2073_v62 = vld [vmem:[#allocation35_spill] sm:$0xff] }
  0x8f   :  { %1141 = vmatprep.subr.mxu0 %v2061_v45  ;;  %1180 = vmatprep.subr.mxu1 %v1527_v19  ;;  %v2072_v19 = vand.u32 4294901760, %v2038_v48 }
  0x90   :  { %1142 = vmatpush3.msra.mxu0 %v2062_v50  ;;  %1181 = vmatpush3.msra.mxu1 %v1538_v33  ;;  %v2067_v33 = vand.u32 4294901760, %v2035_v37 }
  0x91   :  { %1143 = vmatprep.subr.mxu0 %v2063_v59  ;;  %1182 = vmatprep.subr.mxu1 %v1551_v46  ;;  %v2075_v46 = vand.u32 4294901760, %v2039_v20 }
  0x92   :  { %1144 = vmatpush3.msra.mxu0 %v2064_v60  ;;  %1183 = vmatpush3.msra.mxu1 %v1563_v14  ;;  %v2074_v14 = vand.u32 4294901760, %v1683_v39 }
  0x93   :  { %1145 = vmatprep.subr.mxu0 %v2065_v0  ;;  %1184 = vmatprep.subr.mxu1 %v1574_v26 }
  0x94   :  { %1146 = vmatpush3.msra.mxu0 %v2066_v1  ;;  %1185 = vmatpush3.msra.mxu1 %v1593_v28 }
  0x95   :  { %1147 = vmatprep.subr.mxu0 %v2067_v33  ;;  %1186 = vmatprep.subr.mxu1 %v2068_v7 }
  0x96   :  { %1148 = vmatpush3.msra.mxu0 %v2069_v8  ;;  %1187 = vmatpush3.msra.mxu1 %v2033_v52 }
  0x97   :  { %1149 = vmatprep.subr.mxu0 %v2071_v21  ;;  %951 = vmatprep.mubr.f32.mxu1 %v1729_v55 }
  0x98   :  { %1150 = vmatpush3.msra.mxu0 %v2072_v19  ;;  %953 = vmatmul.mubr.f32.vlgmr.msra.gmra.mxu1 %v2073_v62 }
  0x99   :  { %1151 = vmatprep.subr.mxu0 %v2074_v14 }
  0x9a   :  { %1152 = vmatpush3.msra.mxu0 %v2075_v46 }
  0x9b   :  { %849 = vmatmul.mubr.f32.vlgmr.msra.gmra.mxu0 %v2073_v62 }
 0x113   :  { %v1048_v28 = vpop.f32.mrf.mxu1 }
 0x115   :  { %v1049_v13 = vpop.f32.mrf.mxu1 }
 0x116   :  { %v1050_v43 = vadd.f32 %v1049_v13, %v1048_v28 }
 0x11b   :  { %v1013_v26 = vpop.f32.mrf.mxu0 }
 0x11d   :  { %v1014_v57 = vpop.f32.mrf.mxu0 }
 0x11e   :  { %v1015_v44 = vadd.f32 %v1014_v57, %v1013_v26 }
 0x120   :  { %v437_v2 = vadd.f32 %v1050_v43, %v1015_v44 }
 0x134   :  { %v1118_v49 = vpop.f32.mrf.mxu1 }
 0x136   :  { %v1119_v56 = vpop.f32.mrf.mxu1 }
 0x137   :  { %v1120_v39 = vadd.f32 %v1119_v56, %v1118_v49 }
 0x13b   :  { %v1083_v63 = vpop.f32.mrf.mxu0 }
 0x13d   :  { %v1084_v55 = vpop.f32.mrf.mxu0 }
 0x13e   :  { %v1085_v12 = vadd.f32 %v1084_v55, %v1083_v63 }
 0x140   :  { %v575_v34 = vadd.f32 %v1085_v12, %v437_v2 }
 0x142   :  { %v683_v29 = vadd.f32 %v1120_v39, %v575_v34 }
 0x158   :  { %v1188_v54 = vpop.f32.mrf.mxu1 }
 0x15a   :  { %v1189_v47 = vpop.f32.mrf.mxu1 }
 0x15b   :  { %v1153_v51 = vpop.f32.mrf.mxu0  ;;  %v1190_v27 = vadd.f32 %v1189_v47, %v1188_v54 }
 0x15d   :  { %v1154_v18 = vpop.f32.mrf.mxu0 }
 0x15e   :  { %v1155_v38 = vadd.f32 %v1154_v18, %v1153_v51 }
 0x160   :  { %v851_v58 = vadd.f32 %v1155_v38, %v683_v29 }
 0x162   :  { %v955_v48 = vadd.f32 %v1190_v27, %v851_v58 }
 0x164   :  { %v958_v61 = vmax.f32 %v955_v48, 1.1754944e-38 }
 0x166   :  { %1200 = vlog2.f32 %v958_v61 }
 0x173   :  { %v1201_v52 = vpop.eup %1200 }
 0x174   :  { %v960_v6 = vmul.f32 0.6931472, %v1201_v52 }
 0x176   :  { %v961_v37 = vmul.f32 0.15384616, %v960_v6 }
 0x178   :  { %v962_v53 = vmul.f32 1.442695, %v961_v37 }
 0x17a   :  { %1202 = vpow2.f32 %v962_v53 }
 0x187   :  { %v1203_v20 = vpop.eup %1202 }
 0x188   :  { %964 = vst [vmem:[#allocation7] sm:$0xff] %v1203_v20 }
 0x189   :  { %1255 = shalt.err (!%p1252_p0)
}
 0x18a   :  { %974 = dma.vmem_to_hbm [thread:$0]  %s972_s1, 128, %s1910_s2, [#allocation4]  }
 0x18b   :  { %1268 = dma.done.wait [#allocation4], 128  }
 0x18c   :  { %1269 = vsyncadd [#allocation4], 4294967168 }
 0x18d   :  { %978 = vsyncpa [#allocation3], 1 }
 0x18e   :  { %979 = vsyncpa [#allocation6], 1 }
 0x18f   :  { %980 = vsyncpa [#allocation4], 1 }

</bundles_post_ra>
